<compile_context>
chip_gen: v7x
topology: tpu7x:2x2x1
jax: 0.10.0
libtpu: 0.0.40
codegen_flags: <defaults>
</compile_context>

<pallas_src>
import functools
import math

import jax
import jax.numpy as jnp
from jax import lax
from jax.experimental import pallas as pl
from jax.experimental.pallas import tpu as pltpu


_INV_SQRT2 = 1.0 / math.sqrt(2.0)


def _round_up(n, m):
    return ((n + m - 1) // m) * m


def _gelu(v, approximate):
    if approximate:
        return jax.nn.gelu(v, approximate=True)      # tanh form -> EUP
    return 0.5 * v * (1.0 + lax.erf(v * _INV_SQRT2))  # exact erf (nn.GELU default)


# -----------------------------------------------------------------------------
# Shared in-kernel helper: +/-1 row shifts with halo patch.
# -----------------------------------------------------------------------------
def _shifted_rows(x_ref, halo_ref, tl, dt):
    """Return (x, x[l-1], x[l+1]) for the current L-tile, cast to dt.

    Sublane rolls (XLU slot) plus a (tl, 1)-mask select that patches the
    wrapped boundary row with the neighbouring tile's halo row (zero at the
    sequence edges == Conv1d zero padding).  Rolls/selects stay in 32-bit
    (safe on every TPU generation); only the final cast makes MXU operands.
    """
    x = x_ref[...].astype(jnp.float32)                 # (tl, C)
    hp = halo_ref[0:1, :].astype(jnp.float32)          # row just before the tile
    hn = halo_ref[1:2, :].astype(jnp.float32)          # row just after the tile
    row = lax.broadcasted_iota(jnp.int32, (tl, 1), 0)  # (tl, 1) mask, lanes broadcast
    x_prev = jnp.where(row == 0, hp, pltpu.roll(x, 1, axis=0))
    x_next = jnp.where(row == tl - 1, hn, pltpu.roll(x, tl - 1, axis=0))
    return x.astype(dt), x_prev.astype(dt), x_next.astype(dt)


# -----------------------------------------------------------------------------
# Kernel bodies.  One grid step = (L-tile i, batch element b).
# -----------------------------------------------------------------------------
def _taps_kernel(x_ref, halo_ref, wstk_ref, w3t_ref, bh_ref, b3_ref, o_ref,
                 *, tl, approximate_gelu):
    """Safe path (any C/H): four C->H dots + one H->C dot."""
    dt = wstk_ref.dtype
    xb, xpb, xnb = _shifted_rows(x_ref, halo_ref, tl, dt)
    b1 = bh_ref[0:1, :]
    b2 = bh_ref[1:2, :]

    x1 = jnp.dot(xb, wstk_ref[0], preferred_element_type=jnp.float32) + b1
    x2 = (jnp.dot(xpb, wstk_ref[1], preferred_element_type=jnp.float32)   # tap k=0: x[l-1]
          + jnp.dot(xb, wstk_ref[2], preferred_element_type=jnp.float32)  # tap k=1: x[l]
          + jnp.dot(xnb, wstk_ref[3], preferred_element_type=jnp.float32) # tap k=2: x[l+1]
          + b2)

    s = x1 * _gelu(x2, approximate_gelu) + x2 * _gelu(x1, approximate_gelu)
    y = jnp.dot(s.astype(dt), w3t_ref[...], preferred_element_type=jnp.float32) + b3_ref[...]
    o_ref[...] = y.astype(o_ref.dtype)


def _fused_kernel(x_ref, halo_ref, wcen_ref, wside_ref, w3t_ref, bh_ref, b3_ref,
                  o_ref, *, tl, hidden, approximate_gelu):
    """Fused path (C % 128 == 0, H % 128 == 0): two C->H-class dots + one H->C dot."""
    dt = wcen_ref.dtype
    xb, xpb, xnb = _shifted_rows(x_ref, halo_ref, tl, dt)
    b1 = bh_ref[0:1, :]
    b2 = bh_ref[1:2, :]

    # conv1 + conv2 center tap in one (tl, C) @ (C, 2H) dot.
    a = jnp.dot(xb, wcen_ref[...], preferred_element_type=jnp.float32)     # (tl, 2H)
    # conv2 side taps in one (tl, 2C) @ (2C, H) dot (lane-aligned concat).
    xcat = jnp.concatenate([xpb, xnb], axis=1)                             # (tl, 2C)
    x1 = a[:, :hidden] + b1
    x2 = (a[:, hidden:]
          + jnp.dot(xcat, wside_ref[...], preferred_element_type=jnp.float32)
          + b2)

    s = x1 * _gelu(x2, approximate_gelu) + x2 * _gelu(x1, approximate_gelu)
    y = jnp.dot(s.astype(dt), w3t_ref[...], preferred_element_type=jnp.float32) + b3_ref[...]
    o_ref[...] = y.astype(o_ref.dtype)


# -----------------------------------------------------------------------------
# Wrapper: tiling, halos, weight prep, pallas_call.
# -----------------------------------------------------------------------------
def _vmem_capacity_bytes():
    try:
        info = pltpu.get_tpu_info()
        cap = getattr(info, "vmem_capacity_bytes", None)
        if cap:
            return int(cap)
    except Exception:
        pass
    return 64 * 1024 * 1024     # conservative v7x floor


def _pick_tile_l(L, C, H, vmem_cap):
    """Pick (tile_l, padded_L).  tile_l is a multiple of 16 (or == padded_L),
    sized from the per-generation VMEM budget; L without an aligned divisor
    is zero-padded up to a tile multiple."""
    budget = max(8 << 20, int(vmem_cap * 0.30))     # tile intermediates budget
    per_row = 32 * H + 48 * C                       # f32/bf16 intermediates per row (approx)
    cap = budget // max(per_row, 1)
    cap = max(16, min(2048, (cap // 16) * 16))
    if L <= cap:
        l_pad = _round_up(L, 8)
        return l_pad, l_pad
    best = None
    for t in range(cap, 15, -16):
        if L % t == 0:
            best = t
            break
    if best is not None and best * 2 > cap:         # divisor close to the budget cap
        return best, L
    return cap, _round_up(L, cap)                   # pad to a tile multiple


def intra_channel_block(x, params, *, dot_dtype=jnp.bfloat16, tile_l=None,
                        approximate_gelu=False, fuse_matmuls=None,
                        resident_weights=True):
    """x: (B, L, C) float.  Returns (B, L, C); matches IntraChannelBlock.forward
    (inference: dropout p=0 is the identity).  dot_dtype=bf16 => MXU operands
    in bf16 with f32 accumulation (set jnp.float32 for a full-precision path)."""
    B, L, C = x.shape
    w1, b1 = params["w1"], params["b1"]
    w2, b2 = params["w2"], params["b2"]
    w3, b3 = params["w3"], params["b3"]
    H = w1.shape[0]

    vmem_cap = _vmem_capacity_bytes()
    if fuse_matmuls is None:
        fuse_matmuls = (C % 128 == 0) and (H % 128 == 0)

    if tile_l is None:
        tl, l_pad = _pick_tile_l(L, C, H, vmem_cap)
    else:
        tl = int(tile_l)
        assert tl % 8 == 0, "tile_l must be a multiple of 8"
        l_pad = _round_up(max(L, tl), tl)
    nt = l_pad // tl

    xp = x if l_pad == L else jnp.pad(x, ((0, 0), (0, l_pad - L), (0, 0)))

    # Halos, merged into one (B, nt, 2, C) input: row just before / after each
    # L-tile, zeros at the sequence edges (== Conv1d zero padding).
    if nt > 1:
        zrow = jnp.zeros((B, 1, C), x.dtype)
        prev_rows = jnp.concatenate([zrow, xp[:, tl - 1:l_pad - 1:tl, :]], axis=1)
        next_rows = jnp.concatenate([xp[:, tl:l_pad:tl, :], zrow], axis=1)
    else:
        prev_rows = jnp.zeros((B, 1, C), x.dtype)
        next_rows = jnp.zeros((B, 1, C), x.dtype)
    halos = jnp.stack([prev_rows, next_rows], axis=2)               # (B, nt, 2, C)

    # One-time weight prep (JAX glue): pre-transpose, pre-split, pre-cast.
    w3t = w3.T.astype(dot_dtype)                                    # (H, C)
    bh = jnp.stack([b1, b2], axis=0).astype(jnp.float32)            # (2, H)
    b3r = b3.reshape(1, C).astype(jnp.float32)                      # (1, C)

    if fuse_matmuls:
        wcen = jnp.concatenate([w1.T, w2[:, :, 1].T], axis=1).astype(dot_dtype)    # (C, 2H)
        wside = jnp.concatenate([w2[:, :, 0].T, w2[:, :, 2].T], axis=0).astype(dot_dtype)  # (2C, H)
        kernel = functools.partial(_fused_kernel, tl=tl, hidden=H,
                                   approximate_gelu=approximate_gelu)
        weight_args = (wcen, wside, w3t, bh, b3r)
    else:
        wstk = jnp.stack([w1.T, w2[:, :, 0].T, w2[:, :, 1].T, w2[:, :, 2].T],
                         axis=0).astype(dot_dtype)                                  # (4, C, H)
        kernel = functools.partial(_taps_kernel, tl=tl,
                                   approximate_gelu=approximate_gelu)
        weight_args = (wstk, w3t, bh, b3r)

    x_spec = pl.BlockSpec((pl.Squeezed(), tl, C), lambda i, b: (b, i, 0))
    halo_spec = pl.BlockSpec((pl.Squeezed(), pl.Squeezed(), 2, C),
                             lambda i, b: (b, i, 0, 0))
    out_spec = pl.BlockSpec((pl.Squeezed(), tl, C), lambda i, b: (b, i, 0))

    vmem_limit = max(32 << 20, min((vmem_cap * 3) // 4, 100 << 20))

    def _run(resident):
        if resident:
            # Grid-invariant weights resident in VMEM (single copy, no
            # per-step DMA, no double-buffering).
            wspecs = [pl.BlockSpec(memory_space=pltpu.MemorySpace.VMEM)
                      for _ in weight_args]
        else:
            # Conservative fallback: full-array blocks (double-buffered).
            wspecs = [pl.BlockSpec(a.shape, lambda i, b, nd=a.ndim: (0,) * nd)
                      for a in weight_args]
        return pl.pallas_call(
            kernel,
            out_shape=jax.ShapeDtypeStruct((B, l_pad, C), x.dtype),
            grid_spec=pltpu.PrefetchScalarGridSpec(
                num_scalar_prefetch=0,
                grid=(nt, B),                 # L-tiles lead: megacore split works for B == 1
                in_specs=[x_spec, halo_spec] + wspecs,
                out_specs=out_spec,
            ),
            compiler_params=pltpu.CompilerParams(
                dimension_semantics=("parallel", "parallel"),
                vmem_limit_bytes=int(vmem_limit),
            ),
        )(xp, halos, *weight_args)

    try:
        out = _run(resident_weights)
    except Exception:
        out = _run(False)

    return out if l_pad == L else out[:, :L, :]


# -----------------------------------------------------------------------------
# Pure-JAX reference (mirrors the PyTorch forward) with the same bf16-operand /
# f32-accumulate matmul strategy as the kernel, for tight verification.
# -----------------------------------------------------------------------------
def _reference(x, params, dot_dtype=jnp.bfloat16):
    w1 = params["w1"].astype(dot_dtype)                # (H, C)
    w2 = params["w2"].astype(dot_dtype)                # (H, C, 3)
    w3 = params["w3"].astype(dot_dtype)                # (C, H)
    b1, b2, b3 = params["b1"], params["b2"], params["b3"]

    xd = x.astype(dot_dtype)                           # (B, L, C)
    B, L, C = x.shape
    zrow = jnp.zeros((B, 1, C), dot_dtype)
    x_prev = jnp.concatenate([zrow, xd[:, :-1, :]], axis=1)
    x_next = jnp.concatenate([xd[:, 1:, :], zrow], axis=1)

    dot = lambda a, w: jnp.einsum("blc,hc->blh", a, w,
                                  preferred_element_type=jnp.float32)
    x1 = dot(xd, w1) + b1
    x2 = (dot(x_prev, w2[:, :, 0]) + dot(xd, w2[:, :, 1])
          + dot(x_next, w2[:, :, 2]) + b2)
    s = x1 * _gelu(x2, False) + x2 * _gelu(x1, False)
    y = jnp.einsum("blh,ch->blc", s.astype(dot_dtype), w3,
                   preferred_element_type=jnp.float32) + b3
    return y.astype(x.dtype)


# -----------------------------------------------------------------------------
# Parameter init (deterministic, PyTorch-Conv1d-style uniform bounds)
# -----------------------------------------------------------------------------
def init_params(key, in_features, hidden_features):
    ks = jax.random.split(key, 6)

    def u(k, shape, fan_in):
        bound = 1.0 / math.sqrt(fan_in)
        return jax.random.uniform(k, shape, jnp.float32, -bound, bound)

    return {
        "w1": u(ks[0], (hidden_features, in_features), in_features),          # (H, C, 1) squeezed
        "b1": u(ks[1], (hidden_features,), in_features),
        "w2": u(ks[2], (hidden_features, in_features, 3), in_features * 3),   # (H, C, 3)
        "b2": u(ks[3], (hidden_features,), in_features * 3),
        "w3": u(ks[4], (in_features, hidden_features), hidden_features),      # (C, H, 1) squeezed
        "b3": u(ks[5], (in_features,), hidden_features),
    }


if __name__ == "__main__":
    key = jax.random.PRNGKey(0)
    kx, kp, kx2, kx3, kp2 = jax.random.split(key, 5)

    # --- small shapes consistent with the module --------------------------------
    B, L, C_IN, HID = 2, 16, 8, 32
    x = jax.random.normal(kx, (B, L, C_IN), jnp.float32)
    params = init_params(kp, C_IN, HID)
    ref = jax.block_until_ready(_reference(x, params))

    # Single-tile path.
    out = jax.block_until_ready(intra_channel_block(x, params))
    assert out.shape == (B, L, C_IN)
    err = float(jnp.max(jnp.abs(out - ref)))
    assert err < 5e-3, f"single-tile max abs err = {err}"

    # Multi-tile path (exercises the halos across L-tiles).
    out_t = jax.block_until_ready(intra_channel_block(x, params, tile_l=8))
    err = float(jnp.max(jnp.abs(out_t - ref)))
    assert err < 5e-3, f"tiled max abs err = {err}"

    # Ragged L (exercises the pad-to-tile path + halos with padded tail tile).
    xr = jax.random.normal(kx2, (B, 20, C_IN), jnp.float32)
    ref_r = _reference(xr, params)
    out_r = jax.block_until_ready(intra_channel_block(xr, params, tile_l=8))
    err = float(jnp.max(jnp.abs(out_r - ref_r)))
    assert out_r.shape == xr.shape and err < 5e-3, f"ragged max abs err = {err}"

    # Lane-aligned shapes -> fused two-dot path (C % 128 == 0 and H % 128 == 0).
    xf = jax.random.normal(kx3, (1, 256, 128), jnp.float32)
    params_f = init_params(kp2, 128, 128)
    ref_f = _reference(xf, params_f)
    out_f = jax.block_until_ready(intra_channel_block(xf, params_f, tile_l=128))
    err = float(jnp.max(jnp.abs(out_f - ref_f)))
    assert err < 5e-3, f"fused max abs err = {err}"

    print("KERNEL_OK")
</pallas_src>

<mosaic_0001>
module attributes {stable_mosaic.version = 11 : i64} {
  func.func @_taps_kernel(%arg0: i32, %arg1: i32, %arg2: memref<1x16x8xf32, #tpu.memory_space<vmem>>, %arg3: memref<1x1x2x8xf32, #tpu.memory_space<vmem>>, %arg4: memref<4x8x32xbf16, #tpu.memory_space<vmem>>, %arg5: memref<32x8xbf16, #tpu.memory_space<vmem>>, %arg6: memref<2x32xf32, #tpu.memory_space<vmem>>, %arg7: memref<1x8xf32, #tpu.memory_space<vmem>>, %arg8: memref<1x16x8xf32, #tpu.memory_space<vmem>>) attributes {dimension_semantics = [#tpu.dimension_semantics<parallel>, #tpu.dimension_semantics<parallel>], iteration_bounds = array<i64: 1, 2>, scalar_prefetch = 0 : i64, scratch_operands = 0 : i64, tpu.core_type = #tpu.core_type<tc>, window_params = [{transform_indices = @transform_0, window_bounds = array<i64: 1, 16, 8>}, {transform_indices = @transform_1, window_bounds = array<i64: 1, 1, 2, 8>}, {pipeline_mode = #tpu.pipeline_mode<synchronous>, transform_indices = @transform_2, window_bounds = array<i64: 4, 8, 32>}, {pipeline_mode = #tpu.pipeline_mode<synchronous>, transform_indices = @transform_3, window_bounds = array<i64: 32, 8>}, {pipeline_mode = #tpu.pipeline_mode<synchronous>, transform_indices = @transform_4, window_bounds = array<i64: 2, 32>}, {pipeline_mode = #tpu.pipeline_mode<synchronous>, transform_indices = @transform_5, window_bounds = array<i64: 1, 8>}, {transform_indices = @transform_6, window_bounds = array<i64: 1, 16, 8>}]} {
    %c0 = arith.constant 0 : index
    %c0_0 = arith.constant 0 : index
    %c0_1 = arith.constant 0 : index
    %0 = vector.load %arg2[%c0, %c0_0, %c0_1] : memref<1x16x8xf32, #tpu.memory_space<vmem>>, vector<1x16x8xf32>
    %1 = vector.shape_cast %0 : vector<1x16x8xf32> to vector<16x8xf32>
    %c0_2 = arith.constant 0 : index
    %c0_3 = arith.constant 0 : index
    %c0_4 = arith.constant 0 : index
    %c0_5 = arith.constant 0 : index
    %2 = vector.load %arg3[%c0_2, %c0_3, %c0_4, %c0_5] : memref<1x1x2x8xf32, #tpu.memory_space<vmem>>, vector<1x1x1x8xf32>
    %3 = vector.shape_cast %2 : vector<1x1x1x8xf32> to vector<1x8xf32>
    %c0_6 = arith.constant 0 : index
    %c0_7 = arith.constant 0 : index
    %c1 = arith.constant 1 : index
    %c0_8 = arith.constant 0 : index
    %4 = vector.load %arg3[%c0_6, %c0_7, %c1, %c0_8] : memref<1x1x2x8xf32, #tpu.memory_space<vmem>>, vector<1x1x1x8xf32>
    %5 = vector.shape_cast %4 : vector<1x1x1x8xf32> to vector<1x8xf32>
    %6 = tpu.iota {dimensions = array<i32: 0>} : vector<16x1xi32>
    %c0_i32 = arith.constant 0 : i32
    %7 = vector.broadcast %c0_i32 : i32 to vector<16x1xi32>
    %8 = arith.cmpi eq, %6, %7 : vector<16x1xi32>
    %c1_i32 = arith.constant 1 : i32
    %9 = tpu.dynamic_rotate %1 by %c1_i32 dim 0 : vector<16x8xf32>, i32 -> vector<16x8xf32>
    %10 = vector.shape_cast %8 : vector<16x1xi1> to vector<16x1xi1>
    %11 = vector.broadcast %10 : vector<16x1xi1> to vector<16x8xi1>
    %12 = vector.shape_cast %3 : vector<1x8xf32> to vector<1x8xf32>
    %13 = vector.broadcast %12 : vector<1x8xf32> to vector<16x8xf32>
    %14 = arith.select %11, %13, %9 : vector<16x8xi1>, vector<16x8xf32>
    %c15_i32 = arith.constant 15 : i32
    %15 = vector.broadcast %c15_i32 : i32 to vector<16x1xi32>
    %16 = arith.cmpi eq, %6, %15 : vector<16x1xi32>
    %c15_i32_9 = arith.constant 15 : i32
    %17 = tpu.dynamic_rotate %1 by %c15_i32_9 dim 0 : vector<16x8xf32>, i32 -> vector<16x8xf32>
    %18 = vector.shape_cast %16 : vector<16x1xi1> to vector<16x1xi1>
    %19 = vector.broadcast %18 : vector<16x1xi1> to vector<16x8xi1>
    %20 = vector.shape_cast %5 : vector<1x8xf32> to vector<1x8xf32>
    %21 = vector.broadcast %20 : vector<1x8xf32> to vector<16x8xf32>
    %22 = arith.select %19, %21, %17 : vector<16x8xi1>, vector<16x8xf32>
    %23 = arith.truncf %1 : vector<16x8xf32> to vector<16x8xbf16>
    %24 = arith.truncf %14 : vector<16x8xf32> to vector<16x8xbf16>
    %25 = arith.truncf %22 : vector<16x8xf32> to vector<16x8xbf16>
    %c0_10 = arith.constant 0 : index
    %c0_11 = arith.constant 0 : index
    %26 = vector.load %arg6[%c0_10, %c0_11] : memref<2x32xf32, #tpu.memory_space<vmem>>, vector<1x32xf32>
    %c1_12 = arith.constant 1 : index
    %c0_13 = arith.constant 0 : index
    %27 = vector.load %arg6[%c1_12, %c0_13] : memref<2x32xf32, #tpu.memory_space<vmem>>, vector<1x32xf32>
    %c0_14 = arith.constant 0 : index
    %c0_15 = arith.constant 0 : index
    %c0_16 = arith.constant 0 : index
    %28 = vector.load %arg4[%c0_14, %c0_15, %c0_16] : memref<4x8x32xbf16, #tpu.memory_space<vmem>>, vector<1x8x32xbf16>
    %29 = vector.shape_cast %28 : vector<1x8x32xbf16> to vector<8x32xbf16>
    %cst = arith.constant dense<0.000000e+00> : vector<16x32xf32>
    %30 = tpu.matmul %23, %29, %cst {dimension_numbers = #tpu.dot_dimension_numbers<[1], [0], [0], [1], [0, 0, 1, 1], [], []>} : vector<16x8xbf16>, vector<8x32xbf16>, vector<16x32xf32> -> vector<16x32xf32>
    %31 = vector.broadcast %26 : vector<1x32xf32> to vector<16x32xf32>
    %32 = arith.addf %30, %31 : vector<16x32xf32>
    %c1_17 = arith.constant 1 : index
    %c0_18 = arith.constant 0 : index
    %c0_19 = arith.constant 0 : index
    %33 = vector.load %arg4[%c1_17, %c0_18, %c0_19] : memref<4x8x32xbf16, #tpu.memory_space<vmem>>, vector<1x8x32xbf16>
    %34 = vector.shape_cast %33 : vector<1x8x32xbf16> to vector<8x32xbf16>
    %cst_20 = arith.constant dense<0.000000e+00> : vector<16x32xf32>
    %35 = tpu.matmul %24, %34, %cst_20 {dimension_numbers = #tpu.dot_dimension_numbers<[1], [0], [0], [1], [0, 0, 1, 1], [], []>} : vector<16x8xbf16>, vector<8x32xbf16>, vector<16x32xf32> -> vector<16x32xf32>
    %c2 = arith.constant 2 : index
    %c0_21 = arith.constant 0 : index
    %c0_22 = arith.constant 0 : index
    %36 = vector.load %arg4[%c2, %c0_21, %c0_22] : memref<4x8x32xbf16, #tpu.memory_space<vmem>>, vector<1x8x32xbf16>
    %37 = vector.shape_cast %36 : vector<1x8x32xbf16> to vector<8x32xbf16>
    %cst_23 = arith.constant dense<0.000000e+00> : vector<16x32xf32>
    %38 = tpu.matmul %23, %37, %cst_23 {dimension_numbers = #tpu.dot_dimension_numbers<[1], [0], [0], [1], [0, 0, 1, 1], [], []>} : vector<16x8xbf16>, vector<8x32xbf16>, vector<16x32xf32> -> vector<16x32xf32>
    %39 = arith.addf %35, %38 : vector<16x32xf32>
    %c3 = arith.constant 3 : index
    %c0_24 = arith.constant 0 : index
    %c0_25 = arith.constant 0 : index
    %40 = vector.load %arg4[%c3, %c0_24, %c0_25] : memref<4x8x32xbf16, #tpu.memory_space<vmem>>, vector<1x8x32xbf16>
    %41 = vector.shape_cast %40 : vector<1x8x32xbf16> to vector<8x32xbf16>
    %cst_26 = arith.constant dense<0.000000e+00> : vector<16x32xf32>
    %42 = tpu.matmul %25, %41, %cst_26 {dimension_numbers = #tpu.dot_dimension_numbers<[1], [0], [0], [1], [0, 0, 1, 1], [], []>} : vector<16x8xbf16>, vector<8x32xbf16>, vector<16x32xf32> -> vector<16x32xf32>
    %43 = arith.addf %39, %42 : vector<16x32xf32>
    %44 = vector.broadcast %27 : vector<1x32xf32> to vector<16x32xf32>
    %45 = arith.addf %43, %44 : vector<16x32xf32>
    %cst_27 = arith.constant 5.000000e-01 : f32
    %46 = vector.broadcast %cst_27 : f32 to vector<16x32xf32>
    %47 = arith.mulf %46, %45 : vector<16x32xf32>
    %cst_28 = arith.constant 0.707106769 : f32
    %48 = vector.broadcast %cst_28 : f32 to vector<16x32xf32>
    %49 = arith.mulf %45, %48 : vector<16x32xf32>
    %50 = math.erf %49 : vector<16x32xf32>
    %cst_29 = arith.constant 1.000000e+00 : f32
    %51 = vector.broadcast %cst_29 : f32 to vector<16x32xf32>
    %52 = arith.addf %51, %50 : vector<16x32xf32>
    %53 = arith.mulf %47, %52 : vector<16x32xf32>
    %54 = arith.mulf %32, %53 : vector<16x32xf32>
    %cst_30 = arith.constant 5.000000e-01 : f32
    %55 = vector.broadcast %cst_30 : f32 to vector<16x32xf32>
    %56 = arith.mulf %55, %32 : vector<16x32xf32>
    %cst_31 = arith.constant 0.707106769 : f32
    %57 = vector.broadcast %cst_31 : f32 to vector<16x32xf32>
    %58 = arith.mulf %32, %57 : vector<16x32xf32>
    %59 = math.erf %58 : vector<16x32xf32>
    %cst_32 = arith.constant 1.000000e+00 : f32
    %60 = vector.broadcast %cst_32 : f32 to vector<16x32xf32>
    %61 = arith.addf %60, %59 : vector<16x32xf32>
    %62 = arith.mulf %56, %61 : vector<16x32xf32>
    %63 = arith.mulf %45, %62 : vector<16x32xf32>
    %64 = arith.addf %54, %63 : vector<16x32xf32>
    %65 = arith.truncf %64 : vector<16x32xf32> to vector<16x32xbf16>
    %c0_33 = arith.constant 0 : index
    %c0_34 = arith.constant 0 : index
    %66 = vector.load %arg5[%c0_33, %c0_34] : memref<32x8xbf16, #tpu.memory_space<vmem>>, vector<32x8xbf16>
    %cst_35 = arith.constant dense<0.000000e+00> : vector<16x8xf32>
    %67 = tpu.matmul %65, %66, %cst_35 {dimension_numbers = #tpu.dot_dimension_numbers<[1], [0], [0], [1], [0, 0, 1, 1], [], []>} : vector<16x32xbf16>, vector<32x8xbf16>, vector<16x8xf32> -> vector<16x8xf32>
    %c0_36 = arith.constant 0 : index
    %c0_37 = arith.constant 0 : index
    %68 = vector.load %arg7[%c0_36, %c0_37] : memref<1x8xf32, #tpu.memory_space<vmem>>, vector<1x8xf32>
    %69 = vector.broadcast %68 : vector<1x8xf32> to vector<16x8xf32>
    %70 = arith.addf %67, %69 : vector<16x8xf32>
    %c0_38 = arith.constant 0 : index
    %c0_39 = arith.constant 0 : index
    %c0_40 = arith.constant 0 : index
    %71 = vector.load %arg8[%c0_38, %c0_39, %c0_40] : memref<1x16x8xf32, #tpu.memory_space<vmem>>, vector<1x16x8xf32>
    %72 = vector.shape_cast %71 : vector<1x16x8xf32> to vector<16x8xf32>
    %73 = vector.shape_cast %70 : vector<16x8xf32> to vector<1x16x8xf32>
    tpu.vector_store %arg8[%c0_38, %c0_39, %c0_40], %73 {strides = array<i32>} : memref<1x16x8xf32, #tpu.memory_space<vmem>>, vector<1x16x8xf32>,
    return
  }
  func.func @transform_0(%arg0: i32, %arg1: i32) -> (i32, i32, i32) {
    %c0_i32 = arith.constant 0 : i32
    %c0_i32_0 = arith.constant 0 : i32
    return %arg1, %arg0, %c0_i32 : i32, i32, i32
  }
  func.func @transform_1(%arg0: i32, %arg1: i32) -> (i32, i32, i32, i32) {
    %c0_i32 = arith.constant 0 : i32
    %c0_i32_0 = arith.constant 0 : i32
    %c0_i32_1 = arith.constant 0 : i32
    return %arg1, %arg0, %c0_i32, %c0_i32_0 : i32, i32, i32, i32
  }
  func.func @transform_2(%arg0: i32, %arg1: i32) -> (i32, i32, i32) {
    %c0_i32 = arith.constant 0 : i32
    %c0_i32_0 = arith.constant 0 : i32
    %c0_i32_1 = arith.constant 0 : i32
    %c0_i32_2 = arith.constant 0 : i32
    return %c0_i32, %c0_i32_0, %c0_i32_1 : i32, i32, i32
  }
  func.func @transform_3(%arg0: i32, %arg1: i32) -> (i32, i32) {
    %c0_i32 = arith.constant 0 : i32
    %c0_i32_0 = arith.constant 0 : i32
    %c0_i32_1 = arith.constant 0 : i32
    return %c0_i32, %c0_i32_0 : i32, i32
  }
  func.func @transform_4(%arg0: i32, %arg1: i32) -> (i32, i32) {
    %c0_i32 = arith.constant 0 : i32
    %c0_i32_0 = arith.constant 0 : i32
    %c0_i32_1 = arith.constant 0 : i32
    return %c0_i32, %c0_i32_0 : i32, i32
  }
  func.func @transform_5(%arg0: i32, %arg1: i32) -> (i32, i32) {
    %c0_i32 = arith.constant 0 : i32
    %c0_i32_0 = arith.constant 0 : i32
    %c0_i32_1 = arith.constant 0 : i32
    return %c0_i32, %c0_i32_0 : i32, i32
  }
  func.func @transform_6(%arg0: i32, %arg1: i32) -> (i32, i32, i32) {
    %c0_i32 = arith.constant 0 : i32
    %c0_i32_0 = arith.constant 0 : i32
    return %arg1, %arg0, %c0_i32 : i32, i32, i32
  }
}

module attributes {stable_mosaic.version = 11 : i64} {
  func.func @_taps_kernel(%arg0: i32, %arg1: i32, %arg2: memref<1x16x8xf32, #tpu.memory_space<vmem>>, %arg3: memref<1x1x2x8xf32, #tpu.memory_space<vmem>>, %arg4: memref<4x8x32xbf16, #tpu.memory_space<vmem>>, %arg5: memref<32x8xbf16, #tpu.memory_space<vmem>>, %arg6: memref<2x32xf32, #tpu.memory_space<vmem>>, %arg7: memref<1x8xf32, #tpu.memory_space<vmem>>, %arg8: memref<1x16x8xf32, #tpu.memory_space<vmem>>) attributes {dimension_semantics = [#tpu.dimension_semantics<parallel>, #tpu.dimension_semantics<parallel>], iteration_bounds = array<i64: 1, 2>, scalar_prefetch = 0 : i64, scratch_operands = 0 : i64, tpu.core_type = #tpu.core_type<tc>, window_params = [{transform_indices = @transform_0, window_bounds = array<i64: 1, 16, 8>}, {transform_indices = @transform_1, window_bounds = array<i64: 1, 1, 2, 8>}, {pipeline_mode = #tpu.pipeline_mode<synchronous>, transform_indices = @transform_2, window_bounds = array<i64: 4, 8, 32>}, {pipeline_mode = #tpu.pipeline_mode<synchronous>, transform_indices = @transform_3, window_bounds = array<i64: 32, 8>}, {pipeline_mode = #tpu.pipeline_mode<synchronous>, transform_indices = @transform_4, window_bounds = array<i64: 2, 32>}, {pipeline_mode = #tpu.pipeline_mode<synchronous>, transform_indices = @transform_5, window_bounds = array<i64: 1, 8>}, {transform_indices = @transform_6, window_bounds = array<i64: 1, 16, 8>}]} {
    %c0 = arith.constant 0 : index
    %c0_0 = arith.constant 0 : index
    %c0_1 = arith.constant 0 : index
    %0 = vector.load %arg2[%c0, %c0_0, %c0_1] : memref<1x16x8xf32, #tpu.memory_space<vmem>>, vector<1x16x8xf32>
    %1 = vector.shape_cast %0 : vector<1x16x8xf32> to vector<16x8xf32>
    %c0_2 = arith.constant 0 : index
    %c0_3 = arith.constant 0 : index
    %c0_4 = arith.constant 0 : index
    %c0_5 = arith.constant 0 : index
    %2 = vector.load %arg3[%c0_2, %c0_3, %c0_4, %c0_5] : memref<1x1x2x8xf32, #tpu.memory_space<vmem>>, vector<1x1x1x8xf32>
    %3 = vector.shape_cast %2 : vector<1x1x1x8xf32> to vector<1x8xf32>
    %c0_6 = arith.constant 0 : index
    %c0_7 = arith.constant 0 : index
    %c1 = arith.constant 1 : index
    %c0_8 = arith.constant 0 : index
    %4 = vector.load %arg3[%c0_6, %c0_7, %c1, %c0_8] : memref<1x1x2x8xf32, #tpu.memory_space<vmem>>, vector<1x1x1x8xf32>
    %5 = vector.shape_cast %4 : vector<1x1x1x8xf32> to vector<1x8xf32>
    %6 = tpu.iota {dimensions = array<i32: 0>} : vector<16x1xi32>
    %c0_i32 = arith.constant 0 : i32
    %7 = vector.broadcast %c0_i32 : i32 to vector<16x1xi32>
    %8 = arith.cmpi eq, %6, %7 : vector<16x1xi32>
    %c1_i32 = arith.constant 1 : i32
    %9 = tpu.dynamic_rotate %1 by %c1_i32 dim 0 : vector<16x8xf32>, i32 -> vector<16x8xf32>
    %10 = vector.shape_cast %8 : vector<16x1xi1> to vector<16x1xi1>
    %11 = vector.broadcast %10 : vector<16x1xi1> to vector<16x8xi1>
    %12 = vector.shape_cast %3 : vector<1x8xf32> to vector<1x8xf32>
    %13 = vector.broadcast %12 : vector<1x8xf32> to vector<16x8xf32>
    %14 = arith.select %11, %13, %9 : vector<16x8xi1>, vector<16x8xf32>
    %c15_i32 = arith.constant 15 : i32
    %15 = vector.broadcast %c15_i32 : i32 to vector<16x1xi32>
    %16 = arith.cmpi eq, %6, %15 : vector<16x1xi32>
    %c15_i32_9 = arith.constant 15 : i32
    %17 = tpu.dynamic_rotate %1 by %c15_i32_9 dim 0 : vector<16x8xf32>, i32 -> vector<16x8xf32>
    %18 = vector.shape_cast %16 : vector<16x1xi1> to vector<16x1xi1>
    %19 = vector.broadcast %18 : vector<16x1xi1> to vector<16x8xi1>
    %20 = vector.shape_cast %5 : vector<1x8xf32> to vector<1x8xf32>
    %21 = vector.broadcast %20 : vector<1x8xf32> to vector<16x8xf32>
    %22 = arith.select %19, %21, %17 : vector<16x8xi1>, vector<16x8xf32>
    %23 = arith.truncf %1 : vector<16x8xf32> to vector<16x8xbf16>
    %24 = arith.truncf %14 : vector<16x8xf32> to vector<16x8xbf16>
    %25 = arith.truncf %22 : vector<16x8xf32> to vector<16x8xbf16>
    %c0_10 = arith.constant 0 : index
    %c0_11 = arith.constant 0 : index
    %26 = vector.load %arg6[%c0_10, %c0_11] : memref<2x32xf32, #tpu.memory_space<vmem>>, vector<1x32xf32>
    %c1_12 = arith.constant 1 : index
    %c0_13 = arith.constant 0 : index
    %27 = vector.load %arg6[%c1_12, %c0_13] : memref<2x32xf32, #tpu.memory_space<vmem>>, vector<1x32xf32>
    %c0_14 = arith.constant 0 : index
    %c0_15 = arith.constant 0 : index
    %c0_16 = arith.constant 0 : index
    %28 = vector.load %arg4[%c0_14, %c0_15, %c0_16] : memref<4x8x32xbf16, #tpu.memory_space<vmem>>, vector<1x8x32xbf16>
    %29 = vector.shape_cast %28 : vector<1x8x32xbf16> to vector<8x32xbf16>
    %cst = arith.constant dense<0.000000e+00> : vector<16x32xf32>
    %30 = tpu.matmul %23, %29, %cst {dimension_numbers = #tpu.dot_dimension_numbers<[1], [0], [0], [1], [0, 0, 1, 1], [], []>} : vector<16x8xbf16>, vector<8x32xbf16>, vector<16x32xf32> -> vector<16x32xf32>
    %31 = vector.broadcast %26 : vector<1x32xf32> to vector<16x32xf32>
    %32 = arith.addf %30, %31 : vector<16x32xf32>
    %c1_17 = arith.constant 1 : index
    %c0_18 = arith.constant 0 : index
    %c0_19 = arith.constant 0 : index
    %33 = vector.load %arg4[%c1_17, %c0_18, %c0_19] : memref<4x8x32xbf16, #tpu.memory_space<vmem>>, vector<1x8x32xbf16>
    %34 = vector.shape_cast %33 : vector<1x8x32xbf16> to vector<8x32xbf16>
    %cst_20 = arith.constant dense<0.000000e+00> : vector<16x32xf32>
    %35 = tpu.matmul %24, %34, %cst_20 {dimension_numbers = #tpu.dot_dimension_numbers<[1], [0], [0], [1], [0, 0, 1, 1], [], []>} : vector<16x8xbf16>, vector<8x32xbf16>, vector<16x32xf32> -> vector<16x32xf32>
    %c2 = arith.constant 2 : index
    %c0_21 = arith.constant 0 : index
    %c0_22 = arith.constant 0 : index
    %36 = vector.load %arg4[%c2, %c0_21, %c0_22] : memref<4x8x32xbf16, #tpu.memory_space<vmem>>, vector<1x8x32xbf16>
    %37 = vector.shape_cast %36 : vector<1x8x32xbf16> to vector<8x32xbf16>
    %cst_23 = arith.constant dense<0.000000e+00> : vector<16x32xf32>
    %38 = tpu.matmul %23, %37, %cst_23 {dimension_numbers = #tpu.dot_dimension_numbers<[1], [0], [0], [1], [0, 0, 1, 1], [], []>} : vector<16x8xbf16>, vector<8x32xbf16>, vector<16x32xf32> -> vector<16x32xf32>
    %39 = arith.addf %35, %38 : vector<16x32xf32>
    %c3 = arith.constant 3 : index
    %c0_24 = arith.constant 0 : index
    %c0_25 = arith.constant 0 : index
    %40 = vector.load %arg4[%c3, %c0_24, %c0_25] : memref<4x8x32xbf16, #tpu.memory_space<vmem>>, vector<1x8x32xbf16>
    %41 = vector.shape_cast %40 : vector<1x8x32xbf16> to vector<8x32xbf16>
    %cst_26 = arith.constant dense<0.000000e+00> : vector<16x32xf32>
    %42 = tpu.matmul %25, %41, %cst_26 {dimension_numbers = #tpu.dot_dimension_numbers<[1], [0], [0], [1], [0, 0, 1, 1], [], []>} : vector<16x8xbf16>, vector<8x32xbf16>, vector<16x32xf32> -> vector<16x32xf32>
    %43 = arith.addf %39, %42 : vector<16x32xf32>
    %44 = vector.broadcast %27 : vector<1x32xf32> to vector<16x32xf32>
    %45 = arith.addf %43, %44 : vector<16x32xf32>
    %cst_27 = arith.constant 5.000000e-01 : f32
    %46 = vector.broadcast %cst_27 : f32 to vector<16x32xf32>
    %47 = arith.mulf %46, %45 : vector<16x32xf32>
    %cst_28 = arith.constant 0.707106769 : f32
    %48 = vector.broadcast %cst_28 : f32 to vector<16x32xf32>
    %49 = arith.mulf %45, %48 : vector<16x32xf32>
    %50 = math.erf %49 : vector<16x32xf32>
    %cst_29 = arith.constant 1.000000e+00 : f32
    %51 = vector.broadcast %cst_29 : f32 to vector<16x32xf32>
    %52 = arith.addf %51, %50 : vector<16x32xf32>
    %53 = arith.mulf %47, %52 : vector<16x32xf32>
    %54 = arith.mulf %32, %53 : vector<16x32xf32>
    %cst_30 = arith.constant 5.000000e-01 : f32
    %55 = vector.broadcast %cst_30 : f32 to vector<16x32xf32>
    %56 = arith.mulf %55, %32 : vector<16x32xf32>
    %cst_31 = arith.constant 0.707106769 : f32
    %57 = vector.broadcast %cst_31 : f32 to vector<16x32xf32>
    %58 = arith.mulf %32, %57 : vector<16x32xf32>
    %59 = math.erf %58 : vector<16x32xf32>
    %cst_32 = arith.constant 1.000000e+00 : f32
    %60 = vector.broadcast %cst_32 : f32 to vector<16x32xf32>
    %61 = arith.addf %60, %59 : vector<16x32xf32>
    %62 = arith.mulf %56, %61 : vector<16x32xf32>
    %63 = arith.mulf %45, %62 : vector<16x32xf32>
    %64 = arith.addf %54, %63 : vector<16x32xf32>
    %65 = arith.truncf %64 : vector<16x32xf32> to vector<16x32xbf16>
    %c0_33 = arith.constant 0 : index
    %c0_34 = arith.constant 0 : index
    %66 = vector.load %arg5[%c0_33, %c0_34] : memref<32x8xbf16, #tpu.memory_space<vmem>>, vector<32x8xbf16>
    %cst_35 = arith.constant dense<0.000000e+00> : vector<16x8xf32>
    %67 = tpu.matmul %65, %66, %cst_35 {dimension_numbers = #tpu.dot_dimension_numbers<[1], [0], [0], [1], [0, 0, 1, 1], [], []>} : vector<16x32xbf16>, vector<32x8xbf16>, vector<16x8xf32> -> vector<16x8xf32>
    %c0_36 = arith.constant 0 : index
    %c0_37 = arith.constant 0 : index
    %68 = vector.load %arg7[%c0_36, %c0_37] : memref<1x8xf32, #tpu.memory_space<vmem>>, vector<1x8xf32>
    %69 = vector.broadcast %68 : vector<1x8xf32> to vector<16x8xf32>
    %70 = arith.addf %67, %69 : vector<16x8xf32>
    %c0_38 = arith.constant 0 : index
    %c0_39 = arith.constant 0 : index
    %c0_40 = arith.constant 0 : index
    %71 = vector.load %arg8[%c0_38, %c0_39, %c0_40] : memref<1x16x8xf32, #tpu.memory_space<vmem>>, vector<1x16x8xf32>
    %72 = vector.shape_cast %71 : vector<1x16x8xf32> to vector<16x8xf32>
    %73 = vector.shape_cast %70 : vector<16x8xf32> to vector<1x16x8xf32>
    tpu.vector_store %arg8[%c0_38, %c0_39, %c0_40], %73 {strides = array<i32>} : memref<1x16x8xf32, #tpu.memory_space<vmem>>, vector<1x16x8xf32>,
    return
  }
  func.func @transform_0(%arg0: i32, %arg1: i32) -> (i32, i32, i32) {
    %c0_i32 = arith.constant 0 : i32
    %c0_i32_0 = arith.constant 0 : i32
    return %arg1, %arg0, %c0_i32 : i32, i32, i32
  }
  func.func @transform_1(%arg0: i32, %arg1: i32) -> (i32, i32, i32, i32) {
    %c0_i32 = arith.constant 0 : i32
    %c0_i32_0 = arith.constant 0 : i32
    %c0_i32_1 = arith.constant 0 : i32
    return %arg1, %arg0, %c0_i32, %c0_i32_0 : i32, i32, i32, i32
  }
  func.func @transform_2(%arg0: i32, %arg1: i32) -> (i32, i32, i32) {
    %c0_i32 = arith.constant 0 : i32
    %c0_i32_0 = arith.constant 0 : i32
    %c0_i32_1 = arith.constant 0 : i32
    %c0_i32_2 = arith.constant 0 : i32
    return %c0_i32, %c0_i32_0, %c0_i32_1 : i32, i32, i32
  }
  func.func @transform_3(%arg0: i32, %arg1: i32) -> (i32, i32) {
    %c0_i32 = arith.constant 0 : i32
    %c0_i32_0 = arith.constant 0 : i32
    %c0_i32_1 = arith.constant 0 : i32
    return %c0_i32, %c0_i32_0 : i32, i32
  }
  func.func @transform_4(%arg0: i32, %arg1: i32) -> (i32, i32) {
    %c0_i32 = arith.constant 0 : i32
    %c0_i32_0 = arith.constant 0 : i32
    %c0_i32_1 = arith.constant 0 : i32
    return %c0_i32, %c0_i32_0 : i32, i32
  }
  func.func @transform_5(%arg0: i32, %arg1: i32) -> (i32, i32) {
    %c0_i32 = arith.constant 0 : i32
    %c0_i32_0 = arith.constant 0 : i32
    %c0_i32_1 = arith.constant 0 : i32
    return %c0_i32, %c0_i32_0 : i32, i32
  }
  func.func @transform_6(%arg0: i32, %arg1: i32) -> (i32, i32, i32) {
    %c0_i32 = arith.constant 0 : i32
    %c0_i32_0 = arith.constant 0 : i32
    return %arg1, %arg0, %c0_i32 : i32, i32, i32
  }
}

</mosaic_0001>

<bundles_post_ra>
// kernel: tpu_custom_call.1
= control target key start
LH: loop header
LB: loop body
LE: loop exit
PB: predicated region body
PF: predicated region fallthrough
CT: control target
= control target key end

     0   :  { %s940_s21 = smov 0   ;;  %s942_s22 = smov 0   ;;  %s1028_s0 = inlined_call_operand.vmem [shape: f32[2,16,8], index: 0, kind: input, shape index: {}]   ;;  %s1029_s1 = inlined_call_operand.vmem [shape: f32[2,1,2,8], index: 1, kind: input, shape index: {}]   ;;  %s1030_s2 = inlined_call_operand.vmem [shape: bf16[4,8,32], index: 2, kind: input, shape index: {}]   ;;  %s1031_s3 = inlined_call_operand.vmem [shape: bf16[32,8], index: 3, kind: input, shape index: {}]   ;;  %s1032_s4 = inlined_call_operand.vmem [shape: f32[2,32], index: 4, kind: input, shape index: {}]   ;;  %s1033_s5 = inlined_call_operand.vmem [shape: f32[1,8], index: 5, kind: input, shape index: {}]   ;;  %s1034_s6 = inlined_call_operand.vmem [shape: f32[2,16,8], index: 6, kind: output, shape index: {}]  }
   0x1   :  { %s944_s23 = smov 0  }
   0x2 LB: > { %s25_s24 = sadd.s32 1, %s897_s22  ;;  %p775_p0 = scmp.ge.s32.totalorder %s901_s23, 1  ;;  %s901_s23 = sphi %s944_s23, %s16_s23   ;;  %s897_s22 = sphi %s942_s22, %s1036_s22   ;;  %s893_s21 = sphi %s940_s21, %s1035_s21  }
   0x3   : > { %p26_p1 = scmp.ge.s32.totalorder %s25_s24, 2  ;;  %p247_p2 = scmp.lt.s32.totalorder %s901_s23, 3 }
   0x5   : > { %s1038_s24 = smov (%p26_p1, %s25_s24), 0  ;;  %p248_p3 = pnand %p775_p0, %p247_p2 }
   0x6   : > { %v366_v0 = vld [vmem:[%s1030_s2] sm:$0xf] (!%p248_p3)  ;;  %vm375_vm0 = vcmask (!%p248_p3), 1043456   ;;  %v786_v1 = vld [vmem:[%s1030_s2 + $0x8] sm:$0xf] (!%p248_p3)  ;;  %v324_v2 = vlaneseq (!%p248_p3)  ;;  %v903_v3 = vmov (!%p248_p3), 0.0  }
   0x7   : > { %251 = sbr.rel (%p248_p3) target bundleno = 489 (0x1e9), region = 44  ;;  %811 = vmatprep.subr.bf16.mxu0 (!%p248_p3), %v903_v3  ;;  %v377_v4 = vsel (!%p248_p3), %vm375_vm0, %v366_v0, 0  ;;  %817 = vmatprep.subr.bf16.mxu1 (!%p248_p3), %v903_v3  ;;  %v425_v5 = vsel (!%p248_p3), %vm375_vm0, %v786_v1, 0  ;;  %p293_p4 = scmp.lt.s32.totalorder (!%p248_p3), %s893_s21, 1  ;;  %vm904_vm1 = vmmov (!%p248_p3), 0   ;;  %vm371_vm2 = vcmask (!%p248_p3), 64512  }
   0x8   : > { %812 = vmatpush3.bf16.msra.mxu0 (!%p248_p3), %v377_v4  ;;  %818 = vmatpush3.bf16.msra.mxu1 (!%p248_p3), %v425_v5  ;;  %v325_v6 = vshrl.u32 (!%p248_p3), %v324_v2, 7  ;;  %v785_v7 = vld [vmem:[%s1030_s2 + $0x4] sm:$0xf] (!%p248_p3)  ;;  %v789_v8 = vld [vmem:[%s1030_s2 + $0xc] sm:$0xf] (!%p248_p3)  ;;  %vm622_vm7 = vcmask (!%p248_p3), 261120  }
   0x9   : > { %813 = vmatprep.mubr.msk.bf16.mxu0 (!%p248_p3), %vm904_vm1, %v903_v3  ;;  %819 = vmatprep.mubr.msk.bf16.mxu1 (!%p248_p3), %vm904_vm1, %v903_v3  ;;  %v472_v12 = vsel (!%p248_p3), %vm375_vm0, %v785_v7, 0  ;;  %v521_v13 = vsel (!%p248_p3), %vm375_vm0, %v789_v8, 0  ;;  %v869_v29 = vld [vmem:[%s1031_s3] sm:$0xff] (!%p248_p3)   ;;  %v870_v30 = vld [vmem:[%s1031_s3 + $0x8] sm:$0xff] (!%p248_p3)  }
   0xa   : > { %823 = vmatprep.subr.bf16.mxu0 (!%p248_p3), %v903_v3  ;;  %829 = vmatprep.subr.bf16.mxu1 (!%p248_p3), %v903_v3  ;;  %v326_v9 = vadd.s32 (!%p248_p3), 8, %v325_v6  ;;  %vm331_vm3 = vcmp.lt.s32.totalorder (!%p248_p3), %v325_v6, 1  ;;  %vm348_vm4 = vcmp.lt.s32.totalorder (!%p248_p3), %v325_v6, 7  ;;  %vm327_vm5 = vcmp.eq.s32.totalorder (!%p248_p3), %v325_v6, 0  ;;  %v783_v31 = vld [vmem:[%s1032_s4] ss:$0 sm:$0xff] (!%p248_p3) }
   0xb   : > { %v791_v49 = vld [vmem:[%s1032_s4 + $0x1] ss:$0 sm:$0xff] (!%p248_p3) }
   0xc   : > { %vm345_vm6 = vcmp.eq.s32.totalorder (!%p248_p3), %v326_v9, 15 }
   0xe   : > { %s1040_s21 = smov (!%p293_p4, %s893_s21), 1 }
   0xf   : > { %s798_s9 = sshll.u32 %s1040_s21, 4  ;;  %s778_s10 = sshll.u32 %s1040_s21, 1 }
  0x10   : > { %s300_s13 = scalar_lea.vmem %s1028_s0, %s798_s9  ;;  %s308_s16 = scalar_lea.vmem %s1029_s1, %s778_s10 }
  0x11   : > { %v320_v10 = vld [vmem:[%s300_s13] sm:$0xff]  ;;  %v321_v11 = vld [vmem:[%s300_s13 + $0x8] sm:$0xff]  ;;  %s317_s10 = scalar_lea.vmem %s1034_s6, %s798_s9 }
  0x12   : > { %v329_v14 = vrot.slane %v320_v10, 7  ;;  %v330_v15 = vrot.slane %v321_v11, 7  ;;  %v346_v16 = vrot.slane %v320_v10, 1  ;;  %v347_v17 = vrot.slane %v321_v11, 1  ;;  %v781_v19 = vld [vmem:[%s308_s16] ss:$0 sm:$0xff] }
  0x13   : > { %v361_v18 = vpack.c.bf16 %v321_v11, %v320_v10  ;;  %v782_v20 = vld [vmem:[%s308_s16 + $0x1] ss:$0 sm:$0xff] }
  0x14   : > { %v333_v21 = vsel %vm331_vm3, %v330_v15, %v329_v14  ;;  %v350_v22 = vsel %vm348_vm4, %v347_v17, %v346_v16  ;;  %v332_v23 = vsel %vm331_vm3, %v329_v14, %v330_v15  ;;  %v349_v25 = vsel %vm348_vm4, %v346_v16, %v347_v17 }
  0x15   : > { %814 = vmatmul.mubr.msk.bf16.vlgmr.msra.gmra.mrb[0].mxu0 %vm371_vm2, %v361_v18  ;;  %820 = vmatmul.mubr.msk.bf16.vlgmr.msra.gmra.mrb[0].mxu1 %vm371_vm2, %v361_v18  ;;  %v342_v24 = vsel %vm327_vm5, %v781_v19, %v333_v21  ;;  %v360_v26 = vsel %vm345_vm6, %v782_v20, %v350_v22  ;;  %v792_v20 = vld [vmem:[%s1033_s5] ss:$0 sm:$0xff] }
  0x16   : > { %824 = vmatpush3.bf16.msra.mxu0 %v472_v12  ;;  %830 = vmatpush3.bf16.msra.mxu1 %v521_v13  ;;  %v362_v27 = vpack.c.bf16 %v332_v23, %v342_v24  ;;  %v363_v28 = vpack.c.bf16 %v360_v26, %v349_v25 }
  0x17   : > { %825 = vmatprep.mubr.msk.bf16.mxu0 %vm904_vm1, %v903_v3  ;;  %831 = vmatprep.mubr.msk.bf16.mxu1 %vm904_vm1, %v903_v3 }
  0x18   : > { %835 = vmatprep.subr.bf16.mxu0 %v903_v3 }
  0x1d   : > { %826 = vmatmul.mubr.msk.bf16.vlgmr.msra.gmra.mrb[4].mxu0 %vm371_vm2, %v362_v27  ;;  %832 = vmatmul.mubr.msk.bf16.vlgmr.msra.gmra.mrb[4].mxu1 %vm371_vm2, %v363_v28 }
  0x1e   : > { %839 = vmatprep.mubr.msk.bf16.mxu0 %vm904_vm1, %v903_v3  ;;  %836 = vmatpush3.bf16.msra.mxu0 %v869_v29 }
  0x1f   : > { %837 = vmatprep.subr.bf16.mxu0 %v903_v3 }
  0x22   : > { %838 = vmatpush3.bf16.msra.mxu0 %v870_v30 }
  0xe8   : > { %v413_v32 = vpop.f32.mrb[0].mxu0  ;;  %v461_v33 = vpop.f32.mrb[0].mxu1 }
  0xe9   : > { %v414_v34 = vadd.f32 %v783_v31, %v413_v32  ;;  %v815_v35 = vpop.f32.mrb[1].mxu0  ;;  %v821_v36 = vpop.f32.mrb[1].mxu1 }
  0xea   : > { %v416_v37 = vpop.f32.mrb[2].mxu0  ;;  %v464_v38 = vpop.f32.mrb[2].mxu1 }
  0xeb   : > { %v586_v39 = vmul.f32 0.70710677, %v414_v34  ;;  %v417_v40 = vadd.f32 %v783_v31, %v416_v37  ;;  %v816_v41 = vpop.f32.mrb[3].mxu0  ;;  %v822_v42 = vpop.f32.mrb[3].mxu1  ;;  %v584_v61 = vmul.f32 0.5, %v414_v34 }
  0xed   : > { %871 = verf.f32 %v586_v39  ;;  %v587_v43 = vmul.f32 0.70710677, %v417_v40  ;;  %v585_v2 = vmul.f32 0.5, %v417_v40 }
  0xef   : > { %873 = verf.f32 %v587_v43 }
  0xf0   : > { %v508_v44 = vpop.f32.mrb[4].mxu0  ;;  %v557_v45 = vpop.f32.mrb[4].mxu1 }
  0xf1   : > { %v509_v46 = vadd.f32 %v508_v44, %v461_v33  ;;  %v827_v47 = vpop.f32.mrb[5].mxu0  ;;  %v833_v48 = vpop.f32.mrb[5].mxu1 }
  0xf2   : > { %v511_v50 = vpop.f32.mrb[6].mxu0  ;;  %v560_v51 = vpop.f32.mrb[6].mxu1 }
  0xf3   : > { %v564_v52 = vadd.f32 %v557_v45, %v509_v46  ;;  %v512_v53 = vadd.f32 %v511_v50, %v464_v38  ;;  %v828_v54 = vpop.f32.mrb[7].mxu0  ;;  %v834_v55 = vpop.f32.mrb[7].mxu1 }
  0xf5   : > { %v570_v56 = vadd.f32 %v791_v49, %v564_v52  ;;  %v565_v57 = vadd.f32 %v560_v51, %v512_v53 }
  0xf7   : > { %v872_v58 = vpop.eup %871  ;;  %v574_v59 = vmul.f32 0.70710677, %v570_v56  ;;  %v571_v60 = vadd.f32 %v791_v49, %v565_v57  ;;  %v572_v8 = vmul.f32 0.5, %v570_v56 }
  0xf8   : > { %v590_v62 = vadd.f32 1.0, %v872_v58 }
  0xf9   : > { %v874_v63 = vpop.eup %873  ;;  %875 = verf.f32 %v574_v59  ;;  %v575_v0 = vmul.f32 0.70710677, %v571_v60  ;;  %v573_v12 = vmul.f32 0.5, %v571_v60 }
  0xfa   : > { %v592_v1 = vmul.f32 %v590_v62, %v584_v61  ;;  %v591_v3 = vadd.f32 1.0, %v874_v63 }
  0xfb   : > { %877 = verf.f32 %v575_v0 }
  0xfc   : > { %v593_v4 = vmul.f32 %v591_v3, %v585_v2  ;;  %v594_v5 = vmul.f32 %v592_v1, %v570_v56 }
  0xfe   : > { %v595_v6 = vmul.f32 %v593_v4, %v571_v60 }
 0x103   : > { %v876_v7 = vpop.eup %875 }
 0x104   : > { %v578_v9 = vadd.f32 1.0, %v876_v7 }
 0x105   : > { %v878_v10 = vpop.eup %877 }
 0x106   : > { %v580_v11 = vmul.f32 %v578_v9, %v572_v8  ;;  %v579_v13 = vadd.f32 1.0, %v878_v10 }
 0x108   : > { %v582_v14 = vmul.f32 %v580_v11, %v414_v34  ;;  %v581_v15 = vmul.f32 %v579_v13, %v573_v12 }
 0x10a   : > { %v596_v16 = vadd.f32 %v594_v5, %v582_v14  ;;  %v583_v17 = vmul.f32 %v581_v15, %v417_v40 }
 0x10c   : > { %v597_v18 = vadd.f32 %v595_v6, %v583_v17 }
 0x10e   : > { %v598_v19 = vpack.c.bf16 %v597_v18, %v596_v16 }
 0x110   : > { %840 = vmatmul.mubr.msk.bf16.vlgmr.msra.gmra.mrb[8].mxu0 %vm622_vm7, %v598_v19 }
 0x1e3   : > { %v660_v21 = vpop.f32.mrb[8].mxu0 }
 0x1e4   : > { %v661_v22 = vadd.f32 %v792_v20, %v660_v21  ;;  %v841_v23 = vpop.f32.mrb[9].mxu0 }
 0x1e5   : > { %v663_v24 = vpop.f32.mrb[10].mxu0 }
 0x1e6   : > { %667 = vst.msk [vmem:[%s317_s10] sm:$0xff] %vm371_vm2, %v661_v22  ;;  %v664_v25 = vadd.f32 %v792_v20, %v663_v24  ;;  %v842_v26 = vpop.f32.mrb[11].mxu0 }
 0x1e8   : > { %668 = vst.msk [vmem:[%s317_s10 + $0x8] sm:$0xff] %vm371_vm2, %v664_v25 }
 0x1e9 PF: > { %s16_s23 = sadd.s32 1, %s901_s23   ;;  %s1035_s21 = smov %s897_s22 }
 0x1ea   : > { %p13_p5 = scmp.ge.s32.totalorder %s16_s23, 4   ;;  %s1036_s22 = smov %s1038_s24 }
 0x1ec   :  { %15 = sbr.rel (!%p13_p5) target bundleno = 2 (0x2), region = 80 }

// kernel: tpu_custom_call.1
= control target key start
LH: loop header
LB: loop body
LE: loop exit
PB: predicated region body
PF: predicated region fallthrough
CT: control target
= control target key end

     0   :  { %s940_s21 = smov 0   ;;  %s942_s22 = smov 0   ;;  %s1028_s0 = inlined_call_operand.vmem [shape: f32[2,16,8], index: 0, kind: input, shape index: {}]   ;;  %s1029_s1 = inlined_call_operand.vmem [shape: f32[2,1,2,8], index: 1, kind: input, shape index: {}]   ;;  %s1030_s2 = inlined_call_operand.vmem [shape: bf16[4,8,32], index: 2, kind: input, shape index: {}]   ;;  %s1031_s3 = inlined_call_operand.vmem [shape: bf16[32,8], index: 3, kind: input, shape index: {}]   ;;  %s1032_s4 = inlined_call_operand.vmem [shape: f32[2,32], index: 4, kind: input, shape index: {}]   ;;  %s1033_s5 = inlined_call_operand.vmem [shape: f32[1,8], index: 5, kind: input, shape index: {}]   ;;  %s1034_s6 = inlined_call_operand.vmem [shape: f32[2,16,8], index: 6, kind: output, shape index: {}]  }
   0x1   :  { %s944_s23 = smov 0  }
   0x2 LB: > { %s25_s24 = sadd.s32 1, %s897_s22  ;;  %p775_p0 = scmp.ge.s32.totalorder %s901_s23, 1  ;;  %s901_s23 = sphi %s944_s23, %s16_s23   ;;  %s897_s22 = sphi %s942_s22, %s1036_s22   ;;  %s893_s21 = sphi %s940_s21, %s1035_s21  }
   0x3   : > { %p26_p1 = scmp.ge.s32.totalorder %s25_s24, 2  ;;  %p247_p2 = scmp.lt.s32.totalorder %s901_s23, 3 }
   0x5   : > { %s1038_s24 = smov (%p26_p1, %s25_s24), 0  ;;  %p248_p3 = pnand %p775_p0, %p247_p2 }
   0x6   : > { %v366_v0 = vld [vmem:[%s1030_s2] sm:$0xf] (!%p248_p3)  ;;  %vm375_vm0 = vcmask (!%p248_p3), 1043456   ;;  %v786_v1 = vld [vmem:[%s1030_s2 + $0x8] sm:$0xf] (!%p248_p3)  ;;  %v324_v2 = vlaneseq (!%p248_p3)  ;;  %v903_v3 = vmov (!%p248_p3), 0.0  }
   0x7   : > { %251 = sbr.rel (%p248_p3) target bundleno = 489 (0x1e9), region = 44  ;;  %811 = vmatprep.subr.bf16.mxu0 (!%p248_p3), %v903_v3  ;;  %v377_v4 = vsel (!%p248_p3), %vm375_vm0, %v366_v0, 0  ;;  %817 = vmatprep.subr.bf16.mxu1 (!%p248_p3), %v903_v3  ;;  %v425_v5 = vsel (!%p248_p3), %vm375_vm0, %v786_v1, 0  ;;  %p293_p4 = scmp.lt.s32.totalorder (!%p248_p3), %s893_s21, 1  ;;  %vm904_vm1 = vmmov (!%p248_p3), 0   ;;  %vm371_vm2 = vcmask (!%p248_p3), 64512  }
   0x8   : > { %812 = vmatpush3.bf16.msra.mxu0 (!%p248_p3), %v377_v4  ;;  %818 = vmatpush3.bf16.msra.mxu1 (!%p248_p3), %v425_v5  ;;  %v325_v6 = vshrl.u32 (!%p248_p3), %v324_v2, 7  ;;  %v785_v7 = vld [vmem:[%s1030_s2 + $0x4] sm:$0xf] (!%p248_p3)  ;;  %v789_v8 = vld [vmem:[%s1030_s2 + $0xc] sm:$0xf] (!%p248_p3)  ;;  %vm622_vm7 = vcmask (!%p248_p3), 261120  }
   0x9   : > { %813 = vmatprep.mubr.msk.bf16.mxu0 (!%p248_p3), %vm904_vm1, %v903_v3  ;;  %819 = vmatprep.mubr.msk.bf16.mxu1 (!%p248_p3), %vm904_vm1, %v903_v3  ;;  %v472_v12 = vsel (!%p248_p3), %vm375_vm0, %v785_v7, 0  ;;  %v521_v13 = vsel (!%p248_p3), %vm375_vm0, %v789_v8, 0  ;;  %v869_v29 = vld [vmem:[%s1031_s3] sm:$0xff] (!%p248_p3)   ;;  %v870_v30 = vld [vmem:[%s1031_s3 + $0x8] sm:$0xff] (!%p248_p3)  }
   0xa   : > { %823 = vmatprep.subr.bf16.mxu0 (!%p248_p3), %v903_v3  ;;  %829 = vmatprep.subr.bf16.mxu1 (!%p248_p3), %v903_v3  ;;  %v326_v9 = vadd.s32 (!%p248_p3), 8, %v325_v6  ;;  %vm331_vm3 = vcmp.lt.s32.totalorder (!%p248_p3), %v325_v6, 1  ;;  %vm348_vm4 = vcmp.lt.s32.totalorder (!%p248_p3), %v325_v6, 7  ;;  %vm327_vm5 = vcmp.eq.s32.totalorder (!%p248_p3), %v325_v6, 0  ;;  %v783_v31 = vld [vmem:[%s1032_s4] ss:$0 sm:$0xff] (!%p248_p3) }
   0xb   : > { %v791_v49 = vld [vmem:[%s1032_s4 + $0x1] ss:$0 sm:$0xff] (!%p248_p3) }
   0xc   : > { %vm345_vm6 = vcmp.eq.s32.totalorder (!%p248_p3), %v326_v9, 15 }
   0xe   : > { %s1040_s21 = smov (!%p293_p4, %s893_s21), 1 }
   0xf   : > { %s798_s9 = sshll.u32 %s1040_s21, 4  ;;  %s778_s10 = sshll.u32 %s1040_s21, 1 }
  0x10   : > { %s300_s13 = scalar_lea.vmem %s1028_s0, %s798_s9  ;;  %s308_s16 = scalar_lea.vmem %s1029_s1, %s778_s10 }
  0x11   : > { %v320_v10 = vld [vmem:[%s300_s13] sm:$0xff]  ;;  %v321_v11 = vld [vmem:[%s300_s13 + $0x8] sm:$0xff]  ;;  %s317_s10 = scalar_lea.vmem %s1034_s6, %s798_s9 }
  0x12   : > { %v329_v14 = vrot.slane %v320_v10, 7  ;;  %v330_v15 = vrot.slane %v321_v11, 7  ;;  %v346_v16 = vrot.slane %v320_v10, 1  ;;  %v347_v17 = vrot.slane %v321_v11, 1  ;;  %v781_v19 = vld [vmem:[%s308_s16] ss:$0 sm:$0xff] }
  0x13   : > { %v361_v18 = vpack.c.bf16 %v321_v11, %v320_v10  ;;  %v782_v20 = vld [vmem:[%s308_s16 + $0x1] ss:$0 sm:$0xff] }
  0x14   : > { %v333_v21 = vsel %vm331_vm3, %v330_v15, %v329_v14  ;;  %v350_v22 = vsel %vm348_vm4, %v347_v17, %v346_v16  ;;  %v332_v23 = vsel %vm331_vm3, %v329_v14, %v330_v15  ;;  %v349_v25 = vsel %vm348_vm4, %v346_v16, %v347_v17 }
  0x15   : > { %814 = vmatmul.mubr.msk.bf16.vlgmr.msra.gmra.mrb[0].mxu0 %vm371_vm2, %v361_v18  ;;  %820 = vmatmul.mubr.msk.bf16.vlgmr.msra.gmra.mrb[0].mxu1 %vm371_vm2, %v361_v18  ;;  %v342_v24 = vsel %vm327_vm5, %v781_v19, %v333_v21  ;;  %v360_v26 = vsel %vm345_vm6, %v782_v20, %v350_v22  ;;  %v792_v20 = vld [vmem:[%s1033_s5] ss:$0 sm:$0xff] }
  0x16   : > { %824 = vmatpush3.bf16.msra.mxu0 %v472_v12  ;;  %830 = vmatpush3.bf16.msra.mxu1 %v521_v13  ;;  %v362_v27 = vpack.c.bf16 %v332_v23, %v342_v24  ;;  %v363_v28 = vpack.c.bf16 %v360_v26, %v349_v25 }
  0x17   : > { %825 = vmatprep.mubr.msk.bf16.mxu0 %vm904_vm1, %v903_v3  ;;  %831 = vmatprep.mubr.msk.bf16.mxu1 %vm904_vm1, %v903_v3 }
  0x18   : > { %835 = vmatprep.subr.bf16.mxu0 %v903_v3 }
  0x1d   : > { %826 = vmatmul.mubr.msk.bf16.vlgmr.msra.gmra.mrb[4].mxu0 %vm371_vm2, %v362_v27  ;;  %832 = vmatmul.mubr.msk.bf16.vlgmr.msra.gmra.mrb[4].mxu1 %vm371_vm2, %v363_v28 }
  0x1e   : > { %839 = vmatprep.mubr.msk.bf16.mxu0 %vm904_vm1, %v903_v3  ;;  %836 = vmatpush3.bf16.msra.mxu0 %v869_v29 }
  0x1f   : > { %837 = vmatprep.subr.bf16.mxu0 %v903_v3 }
  0x22   : > { %838 = vmatpush3.bf16.msra.mxu0 %v870_v30 }
  0xe8   : > { %v413_v32 = vpop.f32.mrb[0].mxu0  ;;  %v461_v33 = vpop.f32.mrb[0].mxu1 }
  0xe9   : > { %v414_v34 = vadd.f32 %v783_v31, %v413_v32  ;;  %v815_v35 = vpop.f32.mrb[1].mxu0  ;;  %v821_v36 = vpop.f32.mrb[1].mxu1 }
  0xea   : > { %v416_v37 = vpop.f32.mrb[2].mxu0  ;;  %v464_v38 = vpop.f32.mrb[2].mxu1 }
  0xeb   : > { %v586_v39 = vmul.f32 0.70710677, %v414_v34  ;;  %v417_v40 = vadd.f32 %v783_v31, %v416_v37  ;;  %v816_v41 = vpop.f32.mrb[3].mxu0  ;;  %v822_v42 = vpop.f32.mrb[3].mxu1  ;;  %v584_v61 = vmul.f32 0.5, %v414_v34 }
  0xed   : > { %871 = verf.f32 %v586_v39  ;;  %v587_v43 = vmul.f32 0.70710677, %v417_v40  ;;  %v585_v2 = vmul.f32 0.5, %v417_v40 }
  0xef   : > { %873 = verf.f32 %v587_v43 }
  0xf0   : > { %v508_v44 = vpop.f32.mrb[4].mxu0  ;;  %v557_v45 = vpop.f32.mrb[4].mxu1 }
  0xf1   : > { %v509_v46 = vadd.f32 %v508_v44, %v461_v33  ;;  %v827_v47 = vpop.f32.mrb[5].mxu0  ;;  %v833_v48 = vpop.f32.mrb[5].mxu1 }
  0xf2   : > { %v511_v50 = vpop.f32.mrb[6].mxu0  ;;  %v560_v51 = vpop.f32.mrb[6].mxu1 }
  0xf3   : > { %v564_v52 = vadd.f32 %v557_v45, %v509_v46  ;;  %v512_v53 = vadd.f32 %v511_v50, %v464_v38  ;;  %v828_v54 = vpop.f32.mrb[7].mxu0  ;;  %v834_v55 = vpop.f32.mrb[7].mxu1 }
  0xf5   : > { %v570_v56 = vadd.f32 %v791_v49, %v564_v52  ;;  %v565_v57 = vadd.f32 %v560_v51, %v512_v53 }
  0xf7   : > { %v872_v58 = vpop.eup %871  ;;  %v574_v59 = vmul.f32 0.70710677, %v570_v56  ;;  %v571_v60 = vadd.f32 %v791_v49, %v565_v57  ;;  %v572_v8 = vmul.f32 0.5, %v570_v56 }
  0xf8   : > { %v590_v62 = vadd.f32 1.0, %v872_v58 }
  0xf9   : > { %v874_v63 = vpop.eup %873  ;;  %875 = verf.f32 %v574_v59  ;;  %v575_v0 = vmul.f32 0.70710677, %v571_v60  ;;  %v573_v12 = vmul.f32 0.5, %v571_v60 }
  0xfa   : > { %v592_v1 = vmul.f32 %v590_v62, %v584_v61  ;;  %v591_v3 = vadd.f32 1.0, %v874_v63 }
  0xfb   : > { %877 = verf.f32 %v575_v0 }
  0xfc   : > { %v593_v4 = vmul.f32 %v591_v3, %v585_v2  ;;  %v594_v5 = vmul.f32 %v592_v1, %v570_v56 }
  0xfe   : > { %v595_v6 = vmul.f32 %v593_v4, %v571_v60 }
 0x103   : > { %v876_v7 = vpop.eup %875 }
 0x104   : > { %v578_v9 = vadd.f32 1.0, %v876_v7 }
 0x105   : > { %v878_v10 = vpop.eup %877 }
 0x106   : > { %v580_v11 = vmul.f32 %v578_v9, %v572_v8  ;;  %v579_v13 = vadd.f32 1.0, %v878_v10 }
 0x108   : > { %v582_v14 = vmul.f32 %v580_v11, %v414_v34  ;;  %v581_v15 = vmul.f32 %v579_v13, %v573_v12 }
 0x10a   : > { %v596_v16 = vadd.f32 %v594_v5, %v582_v14  ;;  %v583_v17 = vmul.f32 %v581_v15, %v417_v40 }
 0x10c   : > { %v597_v18 = vadd.f32 %v595_v6, %v583_v17 }
 0x10e   : > { %v598_v19 = vpack.c.bf16 %v597_v18, %v596_v16 }
 0x110   : > { %840 = vmatmul.mubr.msk.bf16.vlgmr.msra.gmra.mrb[8].mxu0 %vm622_vm7, %v598_v19 }
 0x1e3   : > { %v660_v21 = vpop.f32.mrb[8].mxu0 }
 0x1e4   : > { %v661_v22 = vadd.f32 %v792_v20, %v660_v21  ;;  %v841_v23 = vpop.f32.mrb[9].mxu0 }
 0x1e5   : > { %v663_v24 = vpop.f32.mrb[10].mxu0 }
 0x1e6   : > { %667 = vst.msk [vmem:[%s317_s10] sm:$0xff] %vm371_vm2, %v661_v22  ;;  %v664_v25 = vadd.f32 %v792_v20, %v663_v24  ;;  %v842_v26 = vpop.f32.mrb[11].mxu0 }
 0x1e8   : > { %668 = vst.msk [vmem:[%s317_s10 + $0x8] sm:$0xff] %vm371_vm2, %v664_v25 }
 0x1e9 PF: > { %s16_s23 = sadd.s32 1, %s901_s23   ;;  %s1035_s21 = smov %s897_s22 }
 0x1ea   : > { %p13_p5 = scmp.ge.s32.totalorder %s16_s23, 4   ;;  %s1036_s22 = smov %s1038_s24 }
 0x1ec   :  { %15 = sbr.rel (!%p13_p5) target bundleno = 2 (0x2), region = 80 }

</bundles_post_ra>
